<compile_context>
chip_gen: v6e
topology: v6e:2x2x1
jax: 0.10.0
libtpu: 0.0.40
codegen_flags: <defaults>
</compile_context>

<pallas_src>
import math

import numpy as np
import jax
import jax.numpy as jnp
from jax import lax
from jax.experimental import pallas as pl
from jax.experimental.pallas import tpu as pltpu


def _round_up(x, m):
    return (x + m - 1) // m * m


def _pick_group(num_heads, hd_pad, target_lanes=512):
    """Largest divisor of num_heads with group*hd_pad <= target_lanes."""
    g = max(1, min(num_heads, target_lanes // hd_pad))
    while num_heads % g:
        g -= 1
    return g


def _mha_kernel(group, hd_pad, matmul_dtype, use_acc_scratch):
    """Builds the kernel for one (batch, head-group) grid step."""

    def mm(a, b, contract):
        # MXU matmul with f32 accumulation.  x / weights arrive pre-cast to
        # matmul_dtype (astype is a no-op for them); only the f32
        # intermediates (qkv, attn, ctx) are actually converted.
        return lax.dot_general(
            a.astype(matmul_dtype), b.astype(matmul_dtype),
            dimension_numbers=(contract, ((), ())),
            preferred_element_type=jnp.float32)

    def kernel(x_ref, wqkv_ref, bqkv_ref, wfc_ref, bfc_ref,
               out_ref, attn_ref, ctx_ref, *acc_scratch):
        hg = pl.program_id(1)

        x = x_ref[0]                                          # (S, D)

        # Fused QKV projection for the whole head group: one MXU call,
        # N = 3 * group * hd_pad.  1/sqrt(head_dim) is folded into Wq/bq.
        qkv = mm(x, wqkv_ref[0], ((1,), (0,))) + bqkv_ref[0]   # (S, 3*G*hd_pad) f32

        # Per-head attention inside the group (static unrolled loop; all
        # slices are 128-lane aligned because hd_pad % 128 == 0).
        for g in range(group):
            base = g * 3 * hd_pad
            qh = qkv[:, base:base + hd_pad]                    # (S, hd_pad)
            kh = qkv[:, base + hd_pad:base + 2 * hd_pad]
            vh = qkv[:, base + 2 * hd_pad:base + 3 * hd_pad]

            # Contract the shared hd axis directly — no kh.T / XLU transpose.
            scores = mm(qh, kh, ((1,), (1,)))                  # (S, S)
            scores = scores - jnp.max(scores, axis=-1, keepdims=True)
            e = jnp.exp(scores)
            denom = jnp.sum(e, axis=-1, keepdims=True)
            attn = e * pl.reciprocal(denom, approx=True)       # EUP slot, ~free

            attn_ref[0, g] = attn.astype(attn_ref.dtype)
            ctx_ref[:, g * hd_pad:(g + 1) * hd_pad] = (
                mm(attn, vh, ((1,), (0,))).astype(ctx_ref.dtype))

        # Partial output projection for the whole group: K = group * hd_pad.
        fc_partial = mm(ctx_ref[...], wfc_ref[0], ((1,), (0,)))   # (S, D) f32
        bias = jnp.broadcast_to(bfc_ref[...], fc_partial.shape)   # (S, D) f32

        if use_acc_scratch:
            # Non-f32 output: keep a f32 accumulator scratch across groups.
            acc_ref = acc_scratch[0]

            @pl.when(hg == 0)
            def _():
                acc_ref[...] = bias

            acc_ref[...] += fc_partial

            @pl.when(hg == pl.num_programs(1) - 1)
            def _():
                out_ref[0] = acc_ref[...].astype(out_ref.dtype)
        else:
            # f32 output: accumulate directly into the resident out block
            # (no extra (S, D) scratch — saves VMEM on v7x).
            @pl.when(hg == 0)
            def _():
                out_ref[0] = bias

            out_ref[0] += fc_partial

    return kernel


def mha_pallas(x, params, num_heads, *, matmul_dtype=jnp.bfloat16,
               attn_dtype=jnp.bfloat16, group_size=None):
    """Multi-head self-attention.

    x: (B, S, D).  params: PyTorch-Linear weights stored (in, out), biases (1, D).
    Returns (out (B,S,D) in x.dtype, attn_weights (B,H,S,S) in attn_dtype).
    For lane-dense attention stores S should ideally be a multiple of 128;
    smaller S is still correct (masked partial stores).
    """
    B, S, D = x.shape
    H = num_heads
    assert D % H == 0, "d_model must be divisible by num_heads"
    hd = D // H
    hd_pad = _round_up(hd, 128)            # lane-aligned q/k/v segments
    G = group_size if group_size is not None else _pick_group(H, hd_pad)
    assert H % G == 0, "group_size must divide num_heads"
    n_groups = H // G
    scale = 1.0 / math.sqrt(hd)

    # ---- host-side repacking (pure layout work, done once) -----------------
    def heads(w):                          # (D, D) -> (H, D, hd)
        return jnp.transpose(w.reshape(D, H, hd), (1, 0, 2))

    def pad_last(a):                       # pad the trailing hd axis to hd_pad
        if hd_pad == hd:
            return a
        return jnp.pad(a, [(0, 0)] * (a.ndim - 1) + [(0, hd_pad - hd)])

    wq = pad_last(heads(params["wq"]) * scale)       # scale folded into Wq
    wk = pad_last(heads(params["wk"]))
    wv = pad_last(heads(params["wv"]))
    wqkv = jnp.concatenate([wq, wk, wv], axis=-1)     # (H, D, 3*hd_pad)
    wqkv = (wqkv.reshape(n_groups, G, D, 3 * hd_pad)
                .transpose(0, 2, 1, 3)
                .reshape(n_groups, D, G * 3 * hd_pad)
                .astype(matmul_dtype))                # pre-cast: half the DMA

    bq = pad_last(params["bq"].reshape(H, hd) * scale)  # scale folded into bq
    bk = pad_last(params["bk"].reshape(H, hd))
    bv = pad_last(params["bv"].reshape(H, hd))
    # Biases stay f32: DMA is negligible and it keeps the f32 accumulation exact.
    bqkv = (jnp.concatenate([bq, bk, bv], axis=-1)      # (H, 3*hd_pad)
               .reshape(n_groups, 1, G * 3 * hd_pad)
               .astype(jnp.float32))

    wfc = params["wfc"].reshape(H, hd, D)               # (H, hd, D)
    if hd_pad != hd:
        wfc = jnp.pad(wfc, ((0, 0), (0, hd_pad - hd), (0, 0)))
    wfc = wfc.reshape(n_groups, G * hd_pad, D).astype(matmul_dtype)
    bfc = params["bfc"].astype(jnp.float32)             # (1, D)

    x_in = x.astype(matmul_dtype)
    out_dtype = x.dtype
    use_acc_scratch = (out_dtype != jnp.float32)

    scratch_shapes = [pltpu.VMEM((S, G * hd_pad), matmul_dtype)]   # grouped ctx
    if use_acc_scratch:
        scratch_shapes.append(pltpu.VMEM((S, D), jnp.float32))     # f32 out accum

    grid_spec = pltpu.PrefetchScalarGridSpec(
        num_scalar_prefetch=0,
        grid=(B, n_groups),
        in_specs=[
            pl.BlockSpec((1, S, D), lambda b, h: (b, 0, 0)),               # x
            pl.BlockSpec((1, D, G * 3 * hd_pad), lambda b, h: (h, 0, 0)),  # Wqkv group
            pl.BlockSpec((1, 1, G * 3 * hd_pad), lambda b, h: (h, 0, 0)),  # bqkv group
            pl.BlockSpec((1, G * hd_pad, D), lambda b, h: (h, 0, 0)),      # Wfc group rows
            pl.BlockSpec((1, D), lambda b, h: (0, 0)),                     # bfc
        ],
        out_specs=[
            pl.BlockSpec((1, S, D), lambda b, h: (b, 0, 0)),        # out (accum over groups)
            pl.BlockSpec((1, G, S, S), lambda b, h: (b, h, 0, 0)),  # attention weights
        ],
        scratch_shapes=scratch_shapes,
    )

    out_shapes = (
        jax.ShapeDtypeStruct((B, S, D), out_dtype),
        jax.ShapeDtypeStruct((B, H, S, S), attn_dtype),
    )

    # Size scoped VMEM to the real per-step footprint; cap from the actual
    # chip's VMEM capacity (128 MiB on v5e/v6e, 64 MiB per core on v7x).
    md_b = np.dtype(matmul_dtype).itemsize
    attn_b = np.dtype(attn_dtype).itemsize
    out_b = np.dtype(out_dtype).itemsize
    g3 = G * 3 * hd_pad
    per_step = (2 * S * D * md_b                 # x tile (double-buffered)
                + 2 * D * g3 * md_b              # Wqkv tile
                + 2 * g3 * 4                     # bqkv tile
                + 2 * G * hd_pad * D * md_b      # Wfc tile
                + 2 * D * 4                      # bfc
                + 2 * S * D * out_b              # out tile
                + 2 * G * S * S * attn_b         # attn tile
                + S * G * hd_pad * md_b          # ctx scratch
                + (S * D * 4 if use_acc_scratch else 0))
    try:
        vmem_cap = int(pltpu.get_tpu_info().vmem_capacity_bytes)
    except Exception:
        vmem_cap = 64 * 2 ** 20                  # conservative fallback (v7x per-core)
    vmem_limit = int(min(max(16 * 2 ** 20, per_step + (4 << 20)),
                         int(0.8 * vmem_cap)))

    fn = pl.pallas_call(
        _mha_kernel(G, hd_pad, matmul_dtype, use_acc_scratch),
        out_shape=out_shapes,
        grid_spec=grid_spec,
        compiler_params=pltpu.CompilerParams(
            dimension_semantics=("parallel", "arbitrary"),
            vmem_limit_bytes=vmem_limit,
        ),
    )
    return fn(x_in, wqkv, bqkv, wfc, bfc)


def init_params(key, d_model):
    """Deterministic PyTorch-Linear-style init; weights stored as (in, out)."""
    bound = 1.0 / math.sqrt(d_model)
    keys = jax.random.split(key, 8)

    def u(k, shape):
        return jax.random.uniform(k, shape, jnp.float32, -bound, bound)

    return {
        "wq": u(keys[0], (d_model, d_model)), "bq": u(keys[1], (1, d_model)),
        "wk": u(keys[2], (d_model, d_model)), "bk": u(keys[3], (1, d_model)),
        "wv": u(keys[4], (d_model, d_model)), "bv": u(keys[5], (1, d_model)),
        "wfc": u(keys[6], (d_model, d_model)), "bfc": u(keys[7], (1, d_model)),
    }


def mha_reference(x, params, num_heads):
    B, S, D = x.shape
    hd = D // num_heads
    q = x @ params["wq"] + params["bq"][0]
    k = x @ params["wk"] + params["bk"][0]
    v = x @ params["wv"] + params["bv"][0]
    q = q.reshape(B, S, num_heads, hd).transpose(0, 2, 1, 3)
    k = k.reshape(B, S, num_heads, hd).transpose(0, 2, 1, 3)
    v = v.reshape(B, S, num_heads, hd).transpose(0, 2, 1, 3)
    scores = jnp.einsum("bhqd,bhkd->bhqk", q, k) / math.sqrt(hd)
    attn = jax.nn.softmax(scores, axis=-1)
    ctx = jnp.einsum("bhqk,bhkd->bhqd", attn, v)
    ctx = ctx.transpose(0, 2, 1, 3).reshape(B, S, D)
    out = ctx @ params["wfc"] + params["bfc"][0]
    return out, attn


if __name__ == "__main__":
    batch, seq, d_model, num_heads = 2, 8, 32, 4

    key = jax.random.PRNGKey(0)
    k_x, k_p = jax.random.split(key)
    x = jax.random.normal(k_x, (batch, seq, d_model), jnp.float32)
    params = init_params(k_p, d_model)

    out_ref, attn_ref = mha_reference(x, params, num_heads)

    # 1) Default fast path: bf16 operands + bf16 attention-weight output.
    out, attn = mha_pallas(x, params, num_heads)
    jax.block_until_ready((out, attn))
    assert out.dtype == x.dtype and attn.dtype == jnp.bfloat16
    assert jnp.allclose(out, out_ref, atol=3e-2, rtol=3e-2)
    assert jnp.allclose(attn.astype(jnp.float32), attn_ref, atol=2e-2, rtol=2e-2)

    # 2) f32 path with an explicit head-group size of 2: exercises the
    #    across-group output accumulation with tight numerics (the only
    #    approximation left is the EUP reciprocal in the softmax).
    out32, attn32 = mha_pallas(x, params, num_heads,
                               matmul_dtype=jnp.float32,
                               attn_dtype=jnp.float32, group_size=2)
    jax.block_until_ready((out32, attn32))
    assert jnp.allclose(out32, out_ref, atol=2e-3, rtol=2e-3)
    assert jnp.allclose(attn32, attn_ref, atol=2e-3, rtol=2e-3)

    # 3) bf16 activations in/out: exercises the f32 accumulator-scratch path.
    out_bf, attn_bf = mha_pallas(x.astype(jnp.bfloat16), params, num_heads,
                                 group_size=2)
    jax.block_until_ready((out_bf, attn_bf))
    assert out_bf.dtype == jnp.bfloat16
    assert jnp.allclose(out_bf.astype(jnp.float32), out_ref, atol=5e-2, rtol=5e-2)

    print("KERNEL_OK")
</pallas_src>

<mosaic_0001>
module attributes {stable_mosaic.version = 11 : i64} {
  func.func @kernel(%arg0: i32, %arg1: i32, %arg2: memref<1x8x32xbf16, #tpu.memory_space<vmem>>, %arg3: memref<1x32x1536xbf16, #tpu.memory_space<vmem>>, %arg4: memref<1x1x1536xf32, #tpu.memory_space<vmem>>, %arg5: memref<1x512x32xbf16, #tpu.memory_space<vmem>>, %arg6: memref<1x32xf32, #tpu.memory_space<vmem>>, %arg7: memref<1x8x32xf32, #tpu.memory_space<vmem>>, %arg8: memref<1x4x8x8xbf16, #tpu.memory_space<vmem>>, %arg9: memref<8x512xbf16, #tpu.memory_space<vmem>>) attributes {dimension_semantics = [#tpu.dimension_semantics<parallel>, #tpu.dimension_semantics<arbitrary>], iteration_bounds = array<i64: 2, 1>, scalar_prefetch = 0 : i64, scratch_operands = 1 : i64, tpu.core_type = #tpu.core_type<tc>, window_params = [{transform_indices = @transform_0, window_bounds = array<i64: 1, 8, 32>}, {transform_indices = @transform_1, window_bounds = array<i64: 1, 32, 1536>}, {transform_indices = @transform_2, window_bounds = array<i64: 1, 1, 1536>}, {transform_indices = @transform_3, window_bounds = array<i64: 1, 512, 32>}, {pipeline_mode = #tpu.pipeline_mode<synchronous>, transform_indices = @transform_4, window_bounds = array<i64: 1, 32>}, {transform_indices = @transform_5, window_bounds = array<i64: 1, 8, 32>}, {transform_indices = @transform_6, window_bounds = array<i64: 1, 4, 8, 8>}]} {
    %c0 = arith.constant 0 : index
    %c0_0 = arith.constant 0 : index
    %c0_1 = arith.constant 0 : index
    %0 = vector.load %arg2[%c0, %c0_0, %c0_1] : memref<1x8x32xbf16, #tpu.memory_space<vmem>>, vector<1x8x32xbf16>
    %1 = vector.shape_cast %0 : vector<1x8x32xbf16> to vector<8x32xbf16>
    %c0_2 = arith.constant 0 : index
    %c0_3 = arith.constant 0 : index
    %c0_4 = arith.constant 0 : index
    %2 = vector.load %arg3[%c0_2, %c0_3, %c0_4] : memref<1x32x1536xbf16, #tpu.memory_space<vmem>>, vector<1x32x1536xbf16>
    %3 = vector.shape_cast %2 : vector<1x32x1536xbf16> to vector<32x1536xbf16>
    %cst = arith.constant dense<0.000000e+00> : vector<8x1536xf32>
    %4 = tpu.matmul %1, %3, %cst {dimension_numbers = #tpu.dot_dimension_numbers<[1], [0], [0], [1], [0, 0, 1, 1], [], []>} : vector<8x32xbf16>, vector<32x1536xbf16>, vector<8x1536xf32> -> vector<8x1536xf32>
    %c0_5 = arith.constant 0 : index
    %c0_6 = arith.constant 0 : index
    %c0_7 = arith.constant 0 : index
    %5 = vector.load %arg4[%c0_5, %c0_6, %c0_7] : memref<1x1x1536xf32, #tpu.memory_space<vmem>>, vector<1x1x1536xf32>
    %6 = vector.shape_cast %5 : vector<1x1x1536xf32> to vector<1x1536xf32>
    %7 = vector.broadcast %6 : vector<1x1536xf32> to vector<8x1536xf32>
    %8 = arith.addf %4, %7 : vector<8x1536xf32>
    %9 = vector.extract_strided_slice %8 {offsets = [0, 0], sizes = [8, 128], strides = [1, 1]} : vector<8x1536xf32> to vector<8x128xf32>
    %10 = vector.extract_strided_slice %8 {offsets = [0, 128], sizes = [8, 128], strides = [1, 1]} : vector<8x1536xf32> to vector<8x128xf32>
    %11 = vector.extract_strided_slice %8 {offsets = [0, 256], sizes = [8, 128], strides = [1, 1]} : vector<8x1536xf32> to vector<8x128xf32>
    %12 = arith.truncf %9 : vector<8x128xf32> to vector<8x128xbf16>
    %13 = arith.truncf %10 : vector<8x128xf32> to vector<8x128xbf16>
    %cst_8 = arith.constant dense<0.000000e+00> : vector<8x8xf32>
    %14 = tpu.matmul %12, %13, %cst_8 {dimension_numbers = #tpu.dot_dimension_numbers<[1], [1], [0], [0], [0, 0, 1, 0], [], []>} : vector<8x128xbf16>, vector<8x128xbf16>, vector<8x8xf32> -> vector<8x8xf32>
    %cst_9 = arith.constant dense<0xFF800000> : vector<8xf32>
    %15 = vector.multi_reduction <maximumf>, %14, %cst_9 [1] : vector<8x8xf32> to vector<8xf32>
    %16 = vector.shape_cast %15 : vector<8xf32> to vector<8x1xf32>
    %17 = vector.broadcast %16 : vector<8x1xf32> to vector<8x8xf32>
    %18 = arith.subf %14, %17 : vector<8x8xf32>
    %19 = math.exp %18 : vector<8x8xf32>
    %cst_10 = arith.constant dense<0.000000e+00> : vector<8xf32>
    %20 = vector.multi_reduction <add>, %19, %cst_10 [1] : vector<8x8xf32> to vector<8xf32>
    %21 = vector.shape_cast %20 : vector<8xf32> to vector<8x1xf32>
    %22 = tpu.reciprocal %21 {approx = true} : vector<8x1xf32> -> vector<8x1xf32>
    %23 = vector.broadcast %22 : vector<8x1xf32> to vector<8x8xf32>
    %24 = arith.mulf %19, %23 : vector<8x8xf32>
    %25 = arith.truncf %24 : vector<8x8xf32> to vector<8x8xbf16>
    %c0_11 = arith.constant 0 : index
    %c0_12 = arith.constant 0 : index
    %c0_13 = arith.constant 0 : index
    %c0_14 = arith.constant 0 : index
    %26 = vector.load %arg8[%c0_11, %c0_12, %c0_13, %c0_14] : memref<1x4x8x8xbf16, #tpu.memory_space<vmem>>, vector<1x1x8x8xbf16>
    %27 = vector.shape_cast %26 : vector<1x1x8x8xbf16> to vector<8x8xbf16>
    %28 = vector.shape_cast %25 : vector<8x8xbf16> to vector<1x1x8x8xbf16>
    tpu.vector_store %arg8[%c0_11, %c0_12, %c0_13, %c0_14], %28 {strides = array<i32>} : memref<1x4x8x8xbf16, #tpu.memory_space<vmem>>, vector<1x1x8x8xbf16>,
    %29 = arith.truncf %24 : vector<8x8xf32> to vector<8x8xbf16>
    %30 = arith.truncf %11 : vector<8x128xf32> to vector<8x128xbf16>
    %cst_15 = arith.constant dense<0.000000e+00> : vector<8x128xf32>
    %31 = tpu.matmul %29, %30, %cst_15 {dimension_numbers = #tpu.dot_dimension_numbers<[1], [0], [0], [1], [0, 0, 1, 1], [], []>} : vector<8x8xbf16>, vector<8x128xbf16>, vector<8x128xf32> -> vector<8x128xf32>
    %32 = arith.truncf %31 : vector<8x128xf32> to vector<8x128xbf16>
    %c0_16 = arith.constant 0 : index
    %c0_17 = arith.constant 0 : index
    %33 = vector.load %arg9[%c0_16, %c0_17] : memref<8x512xbf16, #tpu.memory_space<vmem>>, vector<8x128xbf16>
    tpu.vector_store %arg9[%c0_16, %c0_17], %32 {strides = array<i32>} : memref<8x512xbf16, #tpu.memory_space<vmem>>, vector<8x128xbf16>,
    %34 = vector.extract_strided_slice %8 {offsets = [0, 384], sizes = [8, 128], strides = [1, 1]} : vector<8x1536xf32> to vector<8x128xf32>
    %35 = vector.extract_strided_slice %8 {offsets = [0, 512], sizes = [8, 128], strides = [1, 1]} : vector<8x1536xf32> to vector<8x128xf32>
    %36 = vector.extract_strided_slice %8 {offsets = [0, 640], sizes = [8, 128], strides = [1, 1]} : vector<8x1536xf32> to vector<8x128xf32>
    %37 = arith.truncf %34 : vector<8x128xf32> to vector<8x128xbf16>
    %38 = arith.truncf %35 : vector<8x128xf32> to vector<8x128xbf16>
    %cst_18 = arith.constant dense<0.000000e+00> : vector<8x8xf32>
    %39 = tpu.matmul %37, %38, %cst_18 {dimension_numbers = #tpu.dot_dimension_numbers<[1], [1], [0], [0], [0, 0, 1, 0], [], []>} : vector<8x128xbf16>, vector<8x128xbf16>, vector<8x8xf32> -> vector<8x8xf32>
    %cst_19 = arith.constant dense<0xFF800000> : vector<8xf32>
    %40 = vector.multi_reduction <maximumf>, %39, %cst_19 [1] : vector<8x8xf32> to vector<8xf32>
    %41 = vector.shape_cast %40 : vector<8xf32> to vector<8x1xf32>
    %42 = vector.broadcast %41 : vector<8x1xf32> to vector<8x8xf32>
    %43 = arith.subf %39, %42 : vector<8x8xf32>
    %44 = math.exp %43 : vector<8x8xf32>
    %cst_20 = arith.constant dense<0.000000e+00> : vector<8xf32>
    %45 = vector.multi_reduction <add>, %44, %cst_20 [1] : vector<8x8xf32> to vector<8xf32>
    %46 = vector.shape_cast %45 : vector<8xf32> to vector<8x1xf32>
    %47 = tpu.reciprocal %46 {approx = true} : vector<8x1xf32> -> vector<8x1xf32>
    %48 = vector.broadcast %47 : vector<8x1xf32> to vector<8x8xf32>
    %49 = arith.mulf %44, %48 : vector<8x8xf32>
    %50 = arith.truncf %49 : vector<8x8xf32> to vector<8x8xbf16>
    %c0_21 = arith.constant 0 : index
    %c1 = arith.constant 1 : index
    %c0_22 = arith.constant 0 : index
    %c0_23 = arith.constant 0 : index
    %51 = vector.load %arg8[%c0_21, %c1, %c0_22, %c0_23] : memref<1x4x8x8xbf16, #tpu.memory_space<vmem>>, vector<1x1x8x8xbf16>
    %52 = vector.shape_cast %51 : vector<1x1x8x8xbf16> to vector<8x8xbf16>
    %53 = vector.shape_cast %50 : vector<8x8xbf16> to vector<1x1x8x8xbf16>
    tpu.vector_store %arg8[%c0_21, %c1, %c0_22, %c0_23], %53 {strides = array<i32>} : memref<1x4x8x8xbf16, #tpu.memory_space<vmem>>, vector<1x1x8x8xbf16>,
    %54 = arith.truncf %49 : vector<8x8xf32> to vector<8x8xbf16>
    %55 = arith.truncf %36 : vector<8x128xf32> to vector<8x128xbf16>
    %cst_24 = arith.constant dense<0.000000e+00> : vector<8x128xf32>
    %56 = tpu.matmul %54, %55, %cst_24 {dimension_numbers = #tpu.dot_dimension_numbers<[1], [0], [0], [1], [0, 0, 1, 1], [], []>} : vector<8x8xbf16>, vector<8x128xbf16>, vector<8x128xf32> -> vector<8x128xf32>
    %57 = arith.truncf %56 : vector<8x128xf32> to vector<8x128xbf16>
    %c0_25 = arith.constant 0 : index
    %c128 = arith.constant 128 : index
    %58 = vector.load %arg9[%c0_25, %c128] : memref<8x512xbf16, #tpu.memory_space<vmem>>, vector<8x128xbf16>
    tpu.vector_store %arg9[%c0_25, %c128], %57 {strides = array<i32>} : memref<8x512xbf16, #tpu.memory_space<vmem>>, vector<8x128xbf16>,
    %59 = vector.extract_strided_slice %8 {offsets = [0, 768], sizes = [8, 128], strides = [1, 1]} : vector<8x1536xf32> to vector<8x128xf32>
    %60 = vector.extract_strided_slice %8 {offsets = [0, 896], sizes = [8, 128], strides = [1, 1]} : vector<8x1536xf32> to vector<8x128xf32>
    %61 = vector.extract_strided_slice %8 {offsets = [0, 1024], sizes = [8, 128], strides = [1, 1]} : vector<8x1536xf32> to vector<8x128xf32>
    %62 = arith.truncf %59 : vector<8x128xf32> to vector<8x128xbf16>
    %63 = arith.truncf %60 : vector<8x128xf32> to vector<8x128xbf16>
    %cst_26 = arith.constant dense<0.000000e+00> : vector<8x8xf32>
    %64 = tpu.matmul %62, %63, %cst_26 {dimension_numbers = #tpu.dot_dimension_numbers<[1], [1], [0], [0], [0, 0, 1, 0], [], []>} : vector<8x128xbf16>, vector<8x128xbf16>, vector<8x8xf32> -> vector<8x8xf32>
    %cst_27 = arith.constant dense<0xFF800000> : vector<8xf32>
    %65 = vector.multi_reduction <maximumf>, %64, %cst_27 [1] : vector<8x8xf32> to vector<8xf32>
    %66 = vector.shape_cast %65 : vector<8xf32> to vector<8x1xf32>
    %67 = vector.broadcast %66 : vector<8x1xf32> to vector<8x8xf32>
    %68 = arith.subf %64, %67 : vector<8x8xf32>
    %69 = math.exp %68 : vector<8x8xf32>
    %cst_28 = arith.constant dense<0.000000e+00> : vector<8xf32>
    %70 = vector.multi_reduction <add>, %69, %cst_28 [1] : vector<8x8xf32> to vector<8xf32>
    %71 = vector.shape_cast %70 : vector<8xf32> to vector<8x1xf32>
    %72 = tpu.reciprocal %71 {approx = true} : vector<8x1xf32> -> vector<8x1xf32>
    %73 = vector.broadcast %72 : vector<8x1xf32> to vector<8x8xf32>
    %74 = arith.mulf %69, %73 : vector<8x8xf32>
    %75 = arith.truncf %74 : vector<8x8xf32> to vector<8x8xbf16>
    %c0_29 = arith.constant 0 : index
    %c2 = arith.constant 2 : index
    %c0_30 = arith.constant 0 : index
    %c0_31 = arith.constant 0 : index
    %76 = vector.load %arg8[%c0_29, %c2, %c0_30, %c0_31] : memref<1x4x8x8xbf16, #tpu.memory_space<vmem>>, vector<1x1x8x8xbf16>
    %77 = vector.shape_cast %76 : vector<1x1x8x8xbf16> to vector<8x8xbf16>
    %78 = vector.shape_cast %75 : vector<8x8xbf16> to vector<1x1x8x8xbf16>
    tpu.vector_store %arg8[%c0_29, %c2, %c0_30, %c0_31], %78 {strides = array<i32>} : memref<1x4x8x8xbf16, #tpu.memory_space<vmem>>, vector<1x1x8x8xbf16>,
    %79 = arith.truncf %74 : vector<8x8xf32> to vector<8x8xbf16>
    %80 = arith.truncf %61 : vector<8x128xf32> to vector<8x128xbf16>
    %cst_32 = arith.constant dense<0.000000e+00> : vector<8x128xf32>
    %81 = tpu.matmul %79, %80, %cst_32 {dimension_numbers = #tpu.dot_dimension_numbers<[1], [0], [0], [1], [0, 0, 1, 1], [], []>} : vector<8x8xbf16>, vector<8x128xbf16>, vector<8x128xf32> -> vector<8x128xf32>
    %82 = arith.truncf %81 : vector<8x128xf32> to vector<8x128xbf16>
    %c0_33 = arith.constant 0 : index
    %c256 = arith.constant 256 : index
    %83 = vector.load %arg9[%c0_33, %c256] : memref<8x512xbf16, #tpu.memory_space<vmem>>, vector<8x128xbf16>
    tpu.vector_store %arg9[%c0_33, %c256], %82 {strides = array<i32>} : memref<8x512xbf16, #tpu.memory_space<vmem>>, vector<8x128xbf16>,
    %84 = vector.extract_strided_slice %8 {offsets = [0, 1152], sizes = [8, 128], strides = [1, 1]} : vector<8x1536xf32> to vector<8x128xf32>
    %85 = vector.extract_strided_slice %8 {offsets = [0, 1280], sizes = [8, 128], strides = [1, 1]} : vector<8x1536xf32> to vector<8x128xf32>
    %86 = vector.extract_strided_slice %8 {offsets = [0, 1408], sizes = [8, 128], strides = [1, 1]} : vector<8x1536xf32> to vector<8x128xf32>
    %87 = arith.truncf %84 : vector<8x128xf32> to vector<8x128xbf16>
    %88 = arith.truncf %85 : vector<8x128xf32> to vector<8x128xbf16>
    %cst_34 = arith.constant dense<0.000000e+00> : vector<8x8xf32>
    %89 = tpu.matmul %87, %88, %cst_34 {dimension_numbers = #tpu.dot_dimension_numbers<[1], [1], [0], [0], [0, 0, 1, 0], [], []>} : vector<8x128xbf16>, vector<8x128xbf16>, vector<8x8xf32> -> vector<8x8xf32>
    %cst_35 = arith.constant dense<0xFF800000> : vector<8xf32>
    %90 = vector.multi_reduction <maximumf>, %89, %cst_35 [1] : vector<8x8xf32> to vector<8xf32>
    %91 = vector.shape_cast %90 : vector<8xf32> to vector<8x1xf32>
    %92 = vector.broadcast %91 : vector<8x1xf32> to vector<8x8xf32>
    %93 = arith.subf %89, %92 : vector<8x8xf32>
    %94 = math.exp %93 : vector<8x8xf32>
    %cst_36 = arith.constant dense<0.000000e+00> : vector<8xf32>
    %95 = vector.multi_reduction <add>, %94, %cst_36 [1] : vector<8x8xf32> to vector<8xf32>
    %96 = vector.shape_cast %95 : vector<8xf32> to vector<8x1xf32>
    %97 = tpu.reciprocal %96 {approx = true} : vector<8x1xf32> -> vector<8x1xf32>
    %98 = vector.broadcast %97 : vector<8x1xf32> to vector<8x8xf32>
    %99 = arith.mulf %94, %98 : vector<8x8xf32>
    %100 = arith.truncf %99 : vector<8x8xf32> to vector<8x8xbf16>
    %c0_37 = arith.constant 0 : index
    %c3 = arith.constant 3 : index
    %c0_38 = arith.constant 0 : index
    %c0_39 = arith.constant 0 : index
    %101 = vector.load %arg8[%c0_37, %c3, %c0_38, %c0_39] : memref<1x4x8x8xbf16, #tpu.memory_space<vmem>>, vector<1x1x8x8xbf16>
    %102 = vector.shape_cast %101 : vector<1x1x8x8xbf16> to vector<8x8xbf16>
    %103 = vector.shape_cast %100 : vector<8x8xbf16> to vector<1x1x8x8xbf16>
    tpu.vector_store %arg8[%c0_37, %c3, %c0_38, %c0_39], %103 {strides = array<i32>} : memref<1x4x8x8xbf16, #tpu.memory_space<vmem>>, vector<1x1x8x8xbf16>,
    %104 = arith.truncf %99 : vector<8x8xf32> to vector<8x8xbf16>
    %105 = arith.truncf %86 : vector<8x128xf32> to vector<8x128xbf16>
    %cst_40 = arith.constant dense<0.000000e+00> : vector<8x128xf32>
    %106 = tpu.matmul %104, %105, %cst_40 {dimension_numbers = #tpu.dot_dimension_numbers<[1], [0], [0], [1], [0, 0, 1, 1], [], []>} : vector<8x8xbf16>, vector<8x128xbf16>, vector<8x128xf32> -> vector<8x128xf32>
    %107 = arith.truncf %106 : vector<8x128xf32> to vector<8x128xbf16>
    %c0_41 = arith.constant 0 : index
    %c384 = arith.constant 384 : index
    %108 = vector.load %arg9[%c0_41, %c384] : memref<8x512xbf16, #tpu.memory_space<vmem>>, vector<8x128xbf16>
    tpu.vector_store %arg9[%c0_41, %c384], %107 {strides = array<i32>} : memref<8x512xbf16, #tpu.memory_space<vmem>>, vector<8x128xbf16>,
    %c0_42 = arith.constant 0 : index
    %c0_43 = arith.constant 0 : index
    %109 = vector.load %arg9[%c0_42, %c0_43] : memref<8x512xbf16, #tpu.memory_space<vmem>>, vector<8x512xbf16>
    %c0_44 = arith.constant 0 : index
    %c0_45 = arith.constant 0 : index
    %c0_46 = arith.constant 0 : index
    %110 = vector.load %arg5[%c0_44, %c0_45, %c0_46] : memref<1x512x32xbf16, #tpu.memory_space<vmem>>, vector<1x512x32xbf16>
    %111 = vector.shape_cast %110 : vector<1x512x32xbf16> to vector<512x32xbf16>
    %cst_47 = arith.constant dense<0.000000e+00> : vector<8x32xf32>
    %112 = tpu.matmul %109, %111, %cst_47 {dimension_numbers = #tpu.dot_dimension_numbers<[1], [0], [0], [1], [0, 0, 1, 1], [], []>} : vector<8x512xbf16>, vector<512x32xbf16>, vector<8x32xf32> -> vector<8x32xf32>
    %c0_48 = arith.constant 0 : index
    %c0_49 = arith.constant 0 : index
    %113 = vector.load %arg6[%c0_48, %c0_49] : memref<1x32xf32, #tpu.memory_space<vmem>>, vector<1x32xf32>
    %114 = vector.shape_cast %113 : vector<1x32xf32> to vector<1x32xf32>
    %115 = vector.broadcast %114 : vector<1x32xf32> to vector<8x32xf32>
    %c0_i32 = arith.constant 0 : i32
    %116 = arith.cmpi eq, %arg1, %c0_i32 : i32
    %117 = arith.extui %116 : i1 to i32
    %c0_i32_50 = arith.constant 0 : i32
    %118 = arith.cmpi ne, %117, %c0_i32_50 : i32
    scf.if %118 {
      %c0_57 = arith.constant 0 : index
      %c0_58 = arith.constant 0 : index
      %c0_59 = arith.constant 0 : index
      %125 = vector.load %arg7[%c0_57, %c0_58, %c0_59] : memref<1x8x32xf32, #tpu.memory_space<vmem>>, vector<1x8x32xf32>
      %126 = vector.shape_cast %125 : vector<1x8x32xf32> to vector<8x32xf32>
      %127 = vector.shape_cast %115 : vector<8x32xf32> to vector<1x8x32xf32>
      tpu.vector_store %arg7[%c0_57, %c0_58, %c0_59], %127 {strides = array<i32>} : memref<1x8x32xf32, #tpu.memory_space<vmem>>, vector<1x8x32xf32>,
    } else {
    }
    %c0_51 = arith.constant 0 : index
    %c0_52 = arith.constant 0 : index
    %c0_53 = arith.constant 0 : index
    %119 = vector.load %arg7[%c0_51, %c0_52, %c0_53] : memref<1x8x32xf32, #tpu.memory_space<vmem>>, vector<1x8x32xf32>
    %120 = vector.shape_cast %119 : vector<1x8x32xf32> to vector<8x32xf32>
    %121 = arith.addf %120, %112 : vector<8x32xf32>
    %c0_54 = arith.constant 0 : index
    %c0_55 = arith.constant 0 : index
    %c0_56 = arith.constant 0 : index
    %122 = vector.load %arg7[%c0_54, %c0_55, %c0_56] : memref<1x8x32xf32, #tpu.memory_space<vmem>>, vector<1x8x32xf32>
    %123 = vector.shape_cast %122 : vector<1x8x32xf32> to vector<8x32xf32>
    %124 = vector.shape_cast %121 : vector<8x32xf32> to vector<1x8x32xf32>
    tpu.vector_store %arg7[%c0_54, %c0_55, %c0_56], %124 {strides = array<i32>} : memref<1x8x32xf32, #tpu.memory_space<vmem>>, vector<1x8x32xf32>,
    return
  }
  func.func @transform_0(%arg0: i32, %arg1: i32) -> (i32, i32, i32) {
    %c0_i32 = arith.constant 0 : i32
    %c0_i32_0 = arith.constant 0 : i32
    %c0_i32_1 = arith.constant 0 : i32
    return %arg0, %c0_i32, %c0_i32_0 : i32, i32, i32
  }
  func.func @transform_1(%arg0: i32, %arg1: i32) -> (i32, i32, i32) {
    %c0_i32 = arith.constant 0 : i32
    %c0_i32_0 = arith.constant 0 : i32
    %c0_i32_1 = arith.constant 0 : i32
    return %arg1, %c0_i32, %c0_i32_0 : i32, i32, i32
  }
  func.func @transform_2(%arg0: i32, %arg1: i32) -> (i32, i32, i32) {
    %c0_i32 = arith.constant 0 : i32
    %c0_i32_0 = arith.constant 0 : i32
    %c0_i32_1 = arith.constant 0 : i32
    return %arg1, %c0_i32, %c0_i32_0 : i32, i32, i32
  }
  func.func @transform_3(%arg0: i32, %arg1: i32) -> (i32, i32, i32) {
    %c0_i32 = arith.constant 0 : i32
    %c0_i32_0 = arith.constant 0 : i32
    %c0_i32_1 = arith.constant 0 : i32
    return %arg1, %c0_i32, %c0_i32_0 : i32, i32, i32
  }
  func.func @transform_4(%arg0: i32, %arg1: i32) -> (i32, i32) {
    %c0_i32 = arith.constant 0 : i32
    %c0_i32_0 = arith.constant 0 : i32
    %c0_i32_1 = arith.constant 0 : i32
    return %c0_i32, %c0_i32_0 : i32, i32
  }
  func.func @transform_5(%arg0: i32, %arg1: i32) -> (i32, i32, i32) {
    %c0_i32 = arith.constant 0 : i32
    %c0_i32_0 = arith.constant 0 : i32
    %c0_i32_1 = arith.constant 0 : i32
    return %arg0, %c0_i32, %c0_i32_0 : i32, i32, i32
  }
  func.func @transform_6(%arg0: i32, %arg1: i32) -> (i32, i32, i32, i32) {
    %c0_i32 = arith.constant 0 : i32
    %c0_i32_0 = arith.constant 0 : i32
    %c0_i32_1 = arith.constant 0 : i32
    return %arg0, %arg1, %c0_i32, %c0_i32_0 : i32, i32, i32, i32
  }
}

</mosaic_0001>

<bundles_post_ra>
// kernel: tpu_custom_call.1
= control target key start
LH: loop header
LB: loop body
LE: loop exit
PB: predicated region body
PF: predicated region fallthrough
CT: control target
= control target key end

     0   :  { %12 = vsyncpa [#allocation4], 0  ;;  %s2676_s0 = inlined_call_operand.vmem [shape: bf16[2,8,32], index: 0, kind: input, shape index: {}]   ;;  %s2677_s1 = inlined_call_operand.vmem [shape: bf16[1,32,1536], index: 1, kind: input, shape index: {}]   ;;  %s2678_s2 = inlined_call_operand.vmem [shape: f32[1,1,1536], index: 2, kind: input, shape index: {}]   ;;  %s2679_s3 = inlined_call_operand.vmem [shape: bf16[1,512,32], index: 3, kind: input, shape index: {}]   ;;  %s2680_s4 = inlined_call_operand.vmem [shape: f32[1,32], index: 4, kind: input, shape index: {}]   ;;  %s2681_s5 = inlined_call_operand.hbm [shape: f32[2,8,32], index: 5, kind: output, shape index: {0}]   ;;  %s2682_s6 = inlined_call_operand.hbm [shape: bf16[2,4,8,8], index: 6, kind: output, shape index: {1}]  }
   0x1   :  { %14 = vsyncpa [#allocation4 + $0x1], 0 }
   0x2   :  { %15 = vsyncpa [#allocation6], 0 }
   0x3   :  { %17 = vsyncpa [#allocation6 + $0x1], 0  ;;  %s2267_s21 = smov 0   ;;  %s2269_s22 = smov 0  }
   0x4   :  { %s2271_s23 = smov 0   ;;  %s2273_s24 = smov 0  }
   0x5   :  { %s2275_s25 = smov 0   ;;  %s2277_s26 = smov 0  }
   0x6 LB: > { %s1763_s27 = sadd.s32 4294967295, %s2223_s26   ;;  %s1764_s28 = sadd.s32 4294967294, %s2223_s26   ;;  %s2223_s26 = sphi %s2277_s26, %s23_s26   ;;  %s2219_s25 = sphi %s2275_s25, %s2689_s25   ;;  %s2215_s24 = sphi %s2273_s24, %s2688_s24   ;;  %s2211_s23 = sphi %s2271_s23, %s2687_s23   ;;  %s2207_s22 = sphi %s2269_s22, %s2686_s22   ;;  %s2203_s21 = sphi %s2267_s21, %s2685_s21  }
   0x7   : > { %s35_s29 = sadd.s32 1, %s2219_s25  ;;  %s167_s30 = sadd.s32 1, %s2211_s23 }
   0x8   : > { %p37_p0 = scmp.ge.s32.totalorder %s35_s29, 2  ;;  %p177_p1 = scmp.ne.s32.totalorder %s2211_s23, %s2207_s22 }
   0x9   : > { %p178_p2 = scmp.eq.s32.totalorder %s1763_s27, 1  ;;  %p183_p3 = scmp.ne.s32.totalorder %s2207_s22, %s2203_s21 }
   0xa   : > { %s2691_s29 = smov (%p37_p0, %s35_s29), 0  ;;  %p184_p5 = scmp.eq.s32.totalorder %s1764_s28, 1 }
   0xb   : > { %p2307_p4 = por %p178_p2, %p177_p1  ;;  %s164_s8 = ssub.s32 %s2219_s25, %s2691_s29 }
   0xc   : > { %p1770_p6 = scmp.ge.s32.totalorder %s2223_s26, 1  ;;  %p165_p7 = scmp.eq.s32.totalorder %s164_s8, 0 }
   0xd   : > { %p2314_p8 = por %p184_p5, %p183_p3  ;;  %p263_p9 = scmp.lt.s32.totalorder %s2223_s26, 3 }
   0xe   : > { %s2320_s10 = scalar_select %p165_p7, %s2211_s23, %s167_s30  }
   0xf   : > { %p264_p10 = pnand %p1770_p6, %p263_p9 }
  0x10   : > { %p311_p11 = scmp.lt.s32.totalorder (!%p264_p10), %s2215_s24, 1  ;;  %s2487_s8 = sand.u32 (!%p264_p10), 1, %s2207_s22  }
  0x11   : > { %267 = sbr.rel (%p264_p10) target bundleno = 1189 (0x4a5), region = 40  ;;  %s1772_s11 = sshll.u32 (!%p264_p10), %s2487_s8, 4 }
  0x12   : > { %s1585_s14 = scalar_lea.sflag (!%p264_p10), [#allocation6], %s2487_s8  ;;  %s2228_s16 = smov (!%p264_p10), [#allocation5]  }
  0x16   : > { %v2029_v0 = vld [vmem:[%s2677_s1 + $0x64] ss:$48 sps:$4 sm:$0xff]   ;;  %v2031_v1 = vld [vmem:[%s2677_s1 + $0x60] ss:$48 sps:$4 sm:$0xff]   ;;  %v2225_v2 = vmov 0   ;;  %s312_s19 = scalar_select %p311_p11, %s2215_s24, 1  ;;  %v360_v27 = vlaneseq }
  0x17   : > { %576 = vmatprep.mubr.bf16.mxu0 %v2225_v2  ;;  %617 = vmatprep.mubr.bf16.mxu1 %v2225_v2  ;;  %v2032_v3 = vld [vmem:[%s2677_s1 + $0x6c] ss:$48 sps:$4 sm:$0xff]   ;;  %v2034_v4 = vld [vmem:[%s2677_s1 + $0x68] ss:$48 sps:$4 sm:$0xff]   ;;  %v2035_v5 = vld [vmem:[%s2677_s1 + $0x4] ss:$48 sps:$4 sm:$0xff]  }
  0x18   : > { %556 = vmatprep.subr.bf16.mxu0 %v2029_v0  ;;  %v2037_v6 = vld [vmem:[%s2677_s1] ss:$48 sps:$4 sm:$0xff]   ;;  %597 = vmatprep.subr.bf16.mxu1 %v2032_v3  ;;  %v2038_v7 = vld [vmem:[%s2677_s1 + $0xc] ss:$48 sps:$4 sm:$0xff]   ;;  %s1773_s12 = sshll.u32 %s312_s19, 2  ;;  %vm540_vm0 = vcmask 261120  }
  0x19   : > { %557 = vmatpush1.bf16.msra.mxu0 %v2031_v1  ;;  %598 = vmatpush1.bf16.msra.mxu1 %v2034_v4  ;;  %v2040_v8 = vld [vmem:[%s2677_s1 + $0x8] ss:$48 sps:$4 sm:$0xff]   ;;  %s314_s17 = scalar_lea.vmem %s2676_s0, %s1773_s12  ;;  %v2043_v10 = vld [vmem:[%s2677_s1 + $0x74] ss:$48 sps:$4 sm:$0xff]   ;;  %v2041_v11 = vld [vmem:[%s2677_s1 + $0x70] ss:$48 sps:$4 sm:$0xff]  }
  0x1a   : > { %558 = vmatprep.subr.bf16.mxu0 %v2035_v5  ;;  %599 = vmatprep.subr.bf16.mxu1 %v2038_v7  ;;  %v331_v9 = vld [vmem:[%s314_s17] sm:$0xf]  ;;  %v2046_v12 = vld [vmem:[%s2677_s1 + $0x7c] ss:$48 sps:$4 sm:$0xff]   ;;  %v2044_v13 = vld [vmem:[%s2677_s1 + $0x78] ss:$48 sps:$4 sm:$0xff]  }
  0x1b   : > { %v2049_v14 = vld [vmem:[%s2677_s1 + $0x14] ss:$48 sps:$4 sm:$0xff]   ;;  %v2052_v15 = vld [vmem:[%s2677_s1 + $0x1c] ss:$48 sps:$4 sm:$0xff]   ;;  %v2047_v16 = vld [vmem:[%s2677_s1 + $0x10] ss:$48 sps:$4 sm:$0xff]  }
  0x1c   : > { %v2050_v17 = vld [vmem:[%s2677_s1 + $0x18] ss:$48 sps:$4 sm:$0xff]   ;;  %v2055_v18 = vld [vmem:[%s2677_s1 + $0x8c] ss:$48 sps:$4 sm:$0xff]   ;;  %v2061_v19 = vld [vmem:[%s2677_s1 + $0x84] ss:$48 sps:$4 sm:$0xff]  }
  0x1d   : > { %559 = vmatpush1.bf16.msra.mxu0 %v2037_v6  ;;  %600 = vmatpush1.bf16.msra.mxu1 %v2040_v8  ;;  %v2053_v20 = vld [vmem:[%s2677_s1 + $0x88] ss:$48 sps:$4 sm:$0xff]   ;;  %v2059_v21 = vld [vmem:[%s2677_s1 + $0x80] ss:$48 sps:$4 sm:$0xff]   ;;  %v2058_v22 = vld [vmem:[%s2677_s1 + $0x2c] ss:$48 sps:$4 sm:$0xff]  }
  0x1e   : > { %638 = vmatprep.subr.bf16.mxu0 %v2043_v10  ;;  %679 = vmatprep.subr.bf16.mxu1 %v2046_v12  ;;  %v2064_v23 = vld [vmem:[%s2677_s1 + $0x24] ss:$48 sps:$4 sm:$0xff]   ;;  %v2062_v24 = vld [vmem:[%s2677_s1 + $0x20] ss:$48 sps:$4 sm:$0xff]   ;;  %v2056_v25 = vld [vmem:[%s2677_s1 + $0x28] ss:$48 sps:$4 sm:$0xff]  }
  0x1f   : > { %v2226_v26 = vmov 0.0   ;;  %vm2227_vm1 = vmmov 0   ;;  %v2411_v28 = vshrl.u32 %v360_v27, 7  ;;  %v2416_v29 = vld [vmem:[%s2678_s2 + $0x8] sm:$0xf]  ;;  %v356_v34 = vld [vmem:[%s2678_s2] sm:$0xff] }
  0x20   : > { %1798 = vmatmul.mubr.msk.bf16.vlgmr.msra.gmra.mxu0 %vm540_vm0, %v331_v9  ;;  %1799 = vmatmul.mubr.msk.bf16.vlgmr.msra.gmra.mxu1 %vm540_vm0, %v331_v9  ;;  %vm851_vm2 = vcmask 1043456   ;;  %vm832_vm3 = vcmask 64512   ;;  %vm845_vm4 = vcmask 60416   ;;  %s2491_s12 = scalar_lea.vmem [#allocation5], %s1772_s11  ;;  %s1771_s17 = sshll.u32 %s2487_s8, 3 }
  0x21   : > { %639 = vmatpush1.bf16.msra.mxu0 %v2041_v11  ;;  %658 = vmatprep.mubr.bf16.mxu0 %v2225_v2  ;;  %v374_v30 = vsub.s32 3, %v2411_v28  ;;  %v366_v32 = vsub.s32 1, %v2411_v28  ;;  %v370_v33 = vsub.s32 2, %v2411_v28  ;;  %v362_v37 = vsub.s32 0, %v2411_v28  ;;  %s2597_s27 = scalar_lea.vmem [#allocation3], %s1771_s17  ;;  %s1855_s19 = sshll.u32 %s2215_s24, 8 }
  0x22   : > { %640 = vmatprep.subr.bf16.mxu0 %v2049_v14  ;;  %680 = vmatpush1.bf16.msra.mxu1 %v2044_v13  ;;  %v378_v39 = vsub.s32 4, %v2411_v28  ;;  %v382_v44 = vsub.s32 5, %v2411_v28  ;;  %v390_v59 = vsub.s32 7, %v2411_v28  ;;  %v386_v11 = vsub.s32 6, %v2411_v28  ;;  %s2605_s11 = scalar_lea.hbm %s2682_s6, %s1855_s19  ;;  %s1613_s13 = sshll.u32 %s2491_s12, 4  ;;  %s2608_s13 = int_to_ptr.vmem [resolvable:$true] %s1613_s13 }
  0x23   : > { %699 = vmatprep.mubr.bf16.mxu1 %v2225_v2  ;;  %681 = vmatprep.subr.bf16.mxu1 %v2052_v15  ;;  %v2420_v31 = vrot.slane %v2416_v29, %v374_v30  ;;  %v367_v35 = vrot.slane %v356_v34, %v366_v32  ;;  %v371_v36 = vrot.slane %v356_v34, %v370_v33  ;;  %s2117_s15 = scalar_lea.vmem %s2608_s13, 256  ;;  %s2121_s17 = sshll.u32 %s2228_s16, 4  ;;  %s2122_s17 = int_to_ptr.vmem [resolvable:$false] %s2121_s17 }
  0x24   : > { %v363_v45 = vrot.slane %v356_v34, %v362_v37  ;;  %v379_v50 = vrot.slane %v356_v34, %v378_v39  ;;  %v383_v54 = vrot.slane %v356_v34, %v382_v44  ;;  %v375_v1 = vrot.slane %v356_v34, %v374_v30  ;;  %p2118_p12 = scmp.ne.s32.totalorder %s2608_s13, %s2117_s15  ;;  %s2123_s18 = scalar_lea.vmem %s2122_s17, 512 }
  0x25   : > { %641 = vmatpush1.bf16.msra.mxu0 %v2047_v16  ;;  %v391_v5 = vrot.slane %v356_v34, %v390_v59  ;;  %v395_v6 = vrot.slane %v2416_v29, %v362_v37  ;;  %p2124_p1 = scmp.lt.s32.totalorder %s2608_s13, %s2122_s17  ;;  %p2125_p2 = scmp.lt.s32.totalorder %s2123_s18, %s2117_s15 }
  0x26   : > { %720 = vmatprep.subr.bf16.mxu0 %v2061_v19  ;;  %682 = vmatpush1.bf16.msra.mxu1 %v2050_v17  ;;  %p2119_p13 = pnand %p2118_p12, %p2307_p4 }
  0x27   : > { %761 = vmatprep.subr.bf16.mxu1 %v2055_v18  ;;  %v403_v18 = vrot.slane %v2416_v29, %v370_v33  ;;  %p2126_p3 = por %p2125_p2, %p2124_p1 }
  0x28   : > { %1800 = vmatmul.mubr.msk.bf16.vlgmr.msra.gmra.mxu0 %vm540_vm0, %v331_v9  ;;  %p2120_p0 = pneg %p2119_p13 }
  0x29   : > { %721 = vmatpush1.bf16.msra.mxu0 %v2059_v21  ;;  %740 = vmatprep.mubr.bf16.mxu0 %v2225_v2  ;;  %v387_v21 = vrot.slane %v356_v34, %v386_v11 }
  0x2a   : > { %1801 = vmatmul.mubr.msk.bf16.vlgmr.msra.gmra.mxu1 %vm540_vm0, %v331_v9  ;;  %722 = vmatprep.subr.bf16.mxu0 %v2064_v23  ;;  %p2127_p5 = pnand %p2126_p3, %p2120_p0 }
  0x2b   : > { %762 = vmatpush1.bf16.msra.mxu1 %v2053_v20  ;;  %781 = vmatprep.mubr.bf16.mxu1 %v2225_v2 }
  0x2c   : > { %763 = vmatprep.subr.bf16.mxu1 %v2058_v22 }
  0x2d   : > { %723 = vmatpush1.bf16.msra.mxu0 %v2062_v24 }
  0x2e   : > { %1916 = vmatprep.subr.bf16.mxu0 %v2226_v26 }
  0x2f   : > { %764 = vmatpush1.bf16.msra.mxu1 %v2056_v25 }
  0x30   : > { %1802 = vmatmul.mubr.msk.bf16.vlgmr.msra.gmra.mxu0 %vm540_vm0, %v331_v9  ;;  %1922 = vmatprep.subr.bf16.mxu1 %v2226_v26 }
  0x31   : > { %1918 = vmatprep.mubr.msk.bf16.mxu0 %vm2227_vm1, %v2226_v26 }
  0x32   : > { %1803 = vmatmul.mubr.msk.bf16.vlgmr.msra.gmra.mxu1 %vm540_vm0, %v331_v9 }
  0x33   : > { %1924 = vmatprep.mubr.msk.bf16.mxu1 %vm2227_vm1, %v2226_v26 }
  0xe0   : > { %v578_v38 = vpop.f32.mrf.mxu0  ;;  %v619_v41 = vpop.f32.mrf.mxu1 }
  0xe1   : > { %v620_v43 = vadd.f32 %v619_v41, %v371_v36  ;;  %v579_v55 = vadd.f32 %v578_v38, %v363_v45 }
  0xe2   : > { %v580_v40 = vpop.f32.mrf.mxu0  ;;  %v621_v47 = vpop.f32.mrf.mxu1 }
  0xe3   : > { %v581_v42 = vadd.f32 %v580_v40, %v367_v35  ;;  %v847_v49 = vpack.c.bf16 %v620_v43, %v620_v43  ;;  %v790_v0 = vpack.c.bf16 %v579_v55, %v579_v55  ;;  %v622_v10 = vadd.f32 %v621_v47, %v375_v1 }
  0xe4   : > { %v582_v46 = vpop.f32.mrf.mxu0  ;;  %v623_v52 = vpop.f32.mrf.mxu1  ;;  %v399_v40 = vrot.slane %v2416_v29, %v366_v32 }
  0xe5   : > { %v791_v48 = vpack.c.bf16 %v581_v42, %v581_v42  ;;  %v853_v53 = vsel %vm851_vm2, %v847_v49, 0  ;;  %v897_v20 = vpack.c.bf16 %v622_v10, %v622_v10 }
  0xe6   : > { %v583_v51 = vpop.f32.mrf.mxu0  ;;  %v624_v56 = vpop.f32.mrf.mxu1  ;;  %1923 = vmatpush3.bf16.msra.mxu1 %v853_v53 }
  0xe7   : > { %1917 = vmatpush3.bf16.xpose.msra.mxu0 %v791_v48  ;;  %1934 = vmatprep.subr.bf16.mxu1 %v2226_v26 }
  0xe8   : > { %v660_v57 = vpop.f32.mrf.mxu0  ;;  %1928 = vmatprep.subr.bf16.mxu0 %v2226_v26 }
  0xe9   : > { %v661_v58 = vadd.f32 %v660_v57, %v379_v50 }
  0xea   : > { %v662_v60 = vpop.f32.mrf.mxu0  ;;  %v701_v61 = vpop.f32.mrf.mxu1 }
  0xeb   : > { %v898_v62 = vpack.c.bf16 %v661_v58, %v661_v58  ;;  %v663_v63 = vadd.f32 %v662_v60, %v383_v54  ;;  %v702_v33 = vadd.f32 %v701_v61, %v387_v21  ;;  %v2069_v21 = vld [vmem:[%s2679_s3 + $0x68] sm:$0xff]  }
  0xec   : > { %v664_v2 = vpop.f32.mrf.mxu0  ;;  %v703_v3 = vpop.f32.mrf.mxu1 }
  0xed   : > { %v953_v4 = vpack.c.bf16 %v663_v63, %v663_v63  ;;  %v704_v14 = vadd.f32 %v703_v3, %v391_v5  ;;  %v1002_v39 = vpack.c.bf16 %v702_v33, %v702_v33 }
  0xee   : > { %v665_v7 = vpop.f32.mrf.mxu0  ;;  %v705_v8 = vpop.f32.mrf.mxu1  ;;  %1919 = vmatmul.mubr.bf16.vlgmr.msra.gmra.mxu0 %v790_v0 }
  0xef   : > { %v2438_v9 = vsel %vm851_vm2, %v953_v4, 0  ;;  %1929 = vmatpush3.bf16.xpose.msra.mxu0 %v898_v62  ;;  %1930 = vmatprep.mubr.msk.bf16.mxu0 %vm2227_vm1, %v2226_v26  ;;  %v1003_v24 = vpack.c.bf16 %v704_v14, %v704_v14 }
  0xf0   : > { %v706_v12 = vpop.f32.mrf.mxu1  ;;  %1940 = vmatprep.subr.bf16.mxu0 %v2226_v26  ;;  %v742_v13 = vpop.f32.mrf.mxu0 }
  0xf1   : > { %v743_v15 = vadd.f32 %v742_v13, %v395_v6 }
  0xf2   : > { %v783_v16 = vpop.f32.mrf.mxu1  ;;  %v744_v17 = vpop.f32.mrf.mxu0 }
  0xf3   : > { %v1058_v19 = vpack.c.bf16 %v743_v15, %v743_v15  ;;  %v784_v36 = vadd.f32 %v783_v16, %v403_v18  ;;  %v745_v41 = vadd.f32 %v744_v17, %v399_v40  ;;  %v2065_v17 = vld [vmem:[%s2679_s3 + $0x78] sm:$0xff]  }
  0xf4   : > { %v785_v22 = vpop.f32.mrf.mxu1  ;;  %v746_v23 = vpop.f32.mrf.mxu0  ;;  %v2066_v18 = vld [vmem:[%s2679_s3 + $0x38] sm:$0xff]  }
  0xf5   : > { %v786_v25 = vadd.f32 %v785_v22, %v2420_v31  ;;  %v2447_v27 = vsel %vm851_vm2, %v1058_v19, 0  ;;  %v1108_v31 = vpack.c.bf16 %v784_v36, %v784_v36  ;;  %v1107_v42 = vpack.c.bf16 %v745_v41, %v745_v41  ;;  %v2067_v19 = vld [vmem:[%s2679_s3 + $0x70] sm:$0xff]   ;;  %v2070_v22 = vld [vmem:[%s2679_s3 + $0x28] sm:$0xff]  }
  0xf6   : > { %1931 = vmatmul.mubr.bf16.vlgmr.msra.gmra.mxu0 %v897_v20  ;;  %v787_v30 = vpop.f32.mrf.mxu1  ;;  %v747_v35 = vpop.f32.mrf.mxu0  ;;  %v2068_v20 = vld [vmem:[%s2679_s3 + $0x30] sm:$0xff]  }
  0xf7   : > { %v1163_v37 = vpack.c.bf16 %v786_v25, %v786_v25  ;;  %1941 = vmatpush3.bf16.xpose.msra.mxu0 %v1003_v24  ;;  %1942 = vmatprep.mubr.msk.bf16.mxu0 %vm2227_vm1, %v2226_v26 }
  0xf8   : > { %v788_v38 = vpop.f32.mrf.mxu1  ;;  %1952 = vmatprep.subr.bf16.mxu0 %v2226_v26 }
  0xf9   : > { %v2453_v34 = vsel %vm851_vm2, %v1163_v37, 0 }
  0xfe   : > { %1943 = vmatmul.mubr.bf16.vlgmr.msra.gmra.mxu0 %v1002_v39 }
  0xff   : > { %1953 = vmatpush3.bf16.xpose.msra.mxu0 %v1108_v31  ;;  %1954 = vmatprep.mubr.msk.bf16.mxu0 %vm2227_vm1, %v2226_v26 }
 0x100   : > { %1872 = vmatprep.subr.bf16.mxu0 %v2065_v17 }
 0x106   : > { %1955 = vmatmul.mubr.bf16.vlgmr.msra.gmra.mxu0 %v1107_v42 }
 0x107   : > { %1873 = vmatpush3.bf16.msra.mxu0 %v2066_v18 }
 0x108   : > { %1874 = vmatprep.subr.bf16.mxu0 %v2067_v19 }
 0x10b   : > { %1875 = vmatpush3.bf16.msra.mxu0 %v2068_v20 }
 0x10c   : > { %1876 = vmatprep.subr.bf16.mxu0 %v2069_v21 }
 0x10f   : > { %1877 = vmatpush3.bf16.msra.mxu0 %v2070_v22 }
 0x1ae   : > { %v826_v43 = vpop.f32.mrf.mxu0 }
 0x1af   : > { %v833_v44 = vsel %vm832_vm3, %v826_v43, -inf }
 0x1b0   : > { %834 = vmax.xlane.f32.xlu0 %v833_v44  ;;  %v1920_v45 = vpop.f32.mrf.mxu0  ;;  %v2072_v44 = vld [vmem:[%s2679_s3 + $0x20] sm:$0xff]  }
 0x1b1   : > { %v2075_v45 = vld [vmem:[%s2679_s3 + $0x18] sm:$0xff]  }
 0x1b2   : > { %v829_v46 = vpop.f32.mrf.mxu0 }
 0x1b3   : > { %v2076_v46 = vld [vmem:[%s2679_s3 + $0xb8] sm:$0xff]  }
 0x1b4   : > { %v1921_v47 = vpop.f32.mrf.mxu0 }
 0x1b5   : > { %v2077_v47 = vld [vmem:[%s2679_s3 + $0x50] sm:$0xff]  }
 0x1b6   : > { %v933_v48 = vpop.f32.mrf.mxu0 }
 0x1b7   : > { %v939_v28 = vsel %vm832_vm3, %v933_v48, -inf }
 0x1b8   : > { %940 = vmax.xlane.f32.xlu0 %v939_v28  ;;  %v1932_v29 = vpop.f32.mrf.mxu0  ;;  %v2079_v28 = vld [vmem:[%s2679_s3 + $0x10] sm:$0xff]  }
 0x1b9   : > { %v2080_v29 = vld [vmem:[%s2679_s3 + $0xb0] sm:$0xff]  }
 0x1ba   : > { %v936_v32 = vpop.f32.mrf.mxu0 }
 0x1bb   : > { %v2081_v32 = vld [vmem:[%s2679_s3 + $0x48] sm:$0xff]  }
 0x1bc   : > { %v1933_v49 = vpop.f32.mrf.mxu0 }
 0x1bd   : > { %v2082_v49 = vld [vmem:[%s2679_s3 + $0xe8] sm:$0xff]  }
 0x1be   : > { %v1038_v50 = vpop.f32.mrf.mxu0 }
 0x1bf   : > { %v1044_v51 = vsel %vm832_vm3, %v1038_v50, -inf }
 0x1c0   : > { %1045 = vmax.xlane.f32.xlu1 %v1044_v51  ;;  %v1944_v52 = vpop.f32.mrf.mxu0  ;;  %v2084_v51 = vld [vmem:[%s2679_s3 + $0xa8] sm:$0xff]  }
 0x1c1   : > { %v2085_v52 = vld [vmem:[%s2679_s3 + $0x40] sm:$0xff]  }
 0x1c2   : > { %v1041_v53 = vpop.f32.mrf.mxu0 }
 0x1c3   : > { %v2086_v53 = vld [vmem:[%s2679_s3 + $0xe0] sm:$0xff]  }
 0x1c4   : > { %v1945_v54 = vpop.f32.mrf.mxu0 }
 0x1c5   : > { %v2087_v54 = vld [vmem:[%s2679_s3] sm:$0xff]  }
 0x1c6   : > { %v1143_v55 = vpop.f32.mrf.mxu0 }
 0x1c7   : > { %v1149_v56 = vsel %vm832_vm3, %v1143_v55, -inf }
 0x1c8   : > { %1150 = vmax.xlane.f32.xlu1 %v1149_v56  ;;  %v1956_v57 = vpop.f32.mrf.mxu0  ;;  %v2091_v56 = vld [vmem:[%s2679_s3 + $0xd8] sm:$0xff]  }
 0x1c9   : > { %v2092_v57 = vld [vmem:[%s2679_s3 + $0x98] sm:$0xff]  }
 0x1ca   : > { %v1146_v58 = vpop.f32.mrf.mxu0 }
 0x1cb   : > { %v2093_v58 = vld [vmem:[%s2679_s3 + $0xd0] sm:$0xff]  }
 0x1cc   : > { %v1957_v59 = vpop.f32.mrf.mxu0 }
 0x1cd   : > { %v2094_v59 = vld [vmem:[%s2679_s3 + $0x90] sm:$0xff]  }
 0x239   : > { %v835_v60 = vpop.xlane.xlu0 %834 }
 0x23a   : > { %v836_v61 = vsub.f32 %v826_v43, %v835_v60  ;;  %v2071_v43 = vld [vmem:[%s2679_s3 + $0x60] sm:$0xff]   ;;  %v2095_v60 = vld [vmem:[%s2679_s3 + $0xc8] sm:$0xff]  }
 0x23b   : > { %1878 = vmatprep.subr.bf16.mxu0 %v2071_v43 }
 0x23c   : > { %v837_v62 = vmul.f32 1.442695, %v836_v61  ;;  %1879 = vmatpush3.bf16.msra.mxu0 %v2072_v44  ;;  %v2096_v61 = vld [vmem:[%s2679_s3 + $0x88] sm:$0xff]  }
 0x23e   : > { %2101 = vpow2.f32 %v837_v62  ;;  %v2097_v62 = vld [vmem:[%s2679_s3 + $0xc0] sm:$0xff]  }
 0x241   : > { %v941_v63 = vpop.xlane.xlu0 %940 }
 0x242   : > { %v942_v0 = vsub.f32 %v933_v48, %v941_v63  ;;  %v2078_v48 = vld [vmem:[%s2679_s3 + $0xf0] sm:$0xff]   ;;  %v2098_v63 = vld [vmem:[%s2679_s3 + $0x80] sm:$0xff]  }
 0x244   : > { %v943_v1 = vmul.f32 1.442695, %v942_v0 }
 0x246   : > { %2103 = vpow2.f32 %v943_v1 }
 0x249   : > { %v1046_v2 = vpop.xlane.xlu1 %1045 }
 0x24a   : > { %v1047_v3 = vsub.f32 %v1038_v50, %v1046_v2  ;;  %v2083_v50 = vld [vmem:[%s2679_s3 + $0x8] sm:$0xff]  }
 0x24b   : > { %v2102_v4 = vpop.eup %2101 }
 0x24c   : > { %v1048_v5 = vmul.f32 1.442695, %v1047_v3  ;;  %v839_v6 = vsel %vm832_vm3, %v2102_v4, 0.0 }
 0x24d   : > { %840 = vadd.xlane.f32.xlu0 %v839_v6 }
 0x24e   : > { %2105 = vpow2.f32 %v1048_v5 }
 0x251   : > { %v1151_v7 = vpop.xlane.xlu1 %1150 }
 0x252   : > { %v1152_v8 = vsub.f32 %v1143_v55, %v1151_v7  ;;  %v2088_v55 = vld [vmem:[%s2679_s3 + $0xa0] sm:$0xff]  }
 0x253   : > { %v2104_v10 = vpop.eup %2103 }
 0x254   : > { %v1153_v11 = vmul.f32 1.442695, %v1152_v8  ;;  %v945_v12 = vsel %vm832_vm3, %v2104_v10, 0.0 }
 0x255   : > { %946 = vadd.xlane.f32.xlu1 %v945_v12 }
 0x256   : > { %2107 = vpow2.f32 %v1153_v11 }
 0x25b   : > { %v2106_v13 = vpop.eup %2105 }
 0x25c   : > { %v1050_v14 = vsel %vm832_vm3, %v2106_v13, 0.0 }
 0x25d   : > { %1051 = vadd.xlane.f32.xlu0 %v1050_v14 }
 0x263   : > { %v2108_v15 = vpop.eup %2107 }
 0x264   : > { %v1155_v16 = vsel %vm832_vm3, %v2108_v15, 0.0 }
 0x265   : > { %1156 = vadd.xlane.f32.xlu1 %v1155_v16 }
 0x2d6   : > { %v841_v23 = vpop.xlane.xlu0 %840 }
 0x2d7   : > { %2109 = vrcp.f32 %v841_v23 }
 0x2de   : > { %v947_v24 = vpop.xlane.xlu1 %946 }
 0x2df   : > { %2111 = vrcp.f32 %v947_v24 }
 0x2e4   : > { %v2110_v25 = vpop.eup %2109 }
 0x2e5   : > { %v843_v30 = vmul.f32 %v2110_v25, %v2102_v4 }
 0x2e6   : > { %v1052_v35 = vpop.xlane.xlu0 %1051 }
 0x2e7   : > { %2113 = vrcp.f32 %v1052_v35  ;;  %v844_v36 = vpack.c.bf16 %v843_v30, %v843_v30  ;;  %v1847_v35 = vld [vmem:[%s2680_s4] ss:$0 sm:$0xff] }
 0x2e8   : > { %1575 = vst.msk [vmem:[%s2597_s27] sm:$0xff] %vm540_vm0, %v1847_v35 }
 0x2e9   : > { %1925 = vmatmul.mubr.msk.bf16.vlgmr.msra.gmra.mxu1 %vm832_vm3, %v844_v36  ;;  %846 = vst.msk [vmem:[%s2491_s12] sm:$0xf] %vm845_vm4, %v844_v36 }
 0x2ea   : > { %1935 = vmatpush3.bf16.msra.mxu1 %v2438_v9  ;;  %1936 = vmatprep.mubr.msk.bf16.mxu1 %vm2227_vm1, %v2226_v26 }
 0x2eb   : > { %1946 = vmatprep.subr.bf16.mxu1 %v2226_v26 }
 0x2ec   : > { %v2112_v37 = vpop.eup %2111 }
 0x2ed   : > { %v949_v33 = vmul.f32 %v2112_v37, %v2104_v10 }
 0x2ee   : > { %v1157_v38 = vpop.xlane.xlu1 %1156 }
 0x2ef   : > { %2115 = vrcp.f32 %v1157_v38  ;;  %v950_v31 = vpack.c.bf16 %v949_v33, %v949_v33 }
 0x2f1   : > { %1937 = vmatmul.mubr.msk.bf16.vlgmr.msra.gmra.mxu1 %vm832_vm3, %v950_v31  ;;  %1805 = vst.msk [vmem:[%s2491_s12 + $0x4] sm:$0xf] %vm845_vm4, %v950_v31 }
 0x2f2   : > { %1947 = vmatpush3.bf16.msra.mxu1 %v2447_v27  ;;  %1948 = vmatprep.mubr.msk.bf16.mxu1 %vm2227_vm1, %v2226_v26 }
 0x2f3   : > { %1958 = vmatprep.subr.bf16.mxu1 %v2226_v26 }
 0x2f4   : > { %v2114_v9 = vpop.eup %2113 }
 0x2f5   : > { %v1054_v39 = vmul.f32 %v2114_v9, %v2106_v13 }
 0x2f7   : > { %v1055_v40 = vpack.c.bf16 %v1054_v39, %v1054_v39 }
 0x2f9   : > { %1949 = vmatmul.mubr.msk.bf16.vlgmr.msra.gmra.mxu1 %vm832_vm3, %v1055_v40  ;;  %1807 = vst.msk [vmem:[%s2491_s12 + $0x8] sm:$0xf] %vm845_vm4, %v1055_v40 }
 0x2fa   : > { %1959 = vmatpush3.bf16.msra.mxu1 %v2453_v34  ;;  %1960 = vmatprep.mubr.msk.bf16.mxu1 %vm2227_vm1, %v2226_v26  ;;  %v2073_v26 = vld [vmem:[%s2679_s3 + $0x58] sm:$0xff]  }
 0x2fb   : > { %v2074_v34 = vld [vmem:[%s2679_s3 + $0xf8] sm:$0xff]   ;;  %1880 = vmatprep.subr.bf16.mxu0 %v2073_v26 }
 0x2fc   : > { %v2116_v41 = vpop.eup %2115  ;;  %1894 = vmatprep.subr.bf16.mxu1 %v2074_v34  ;;  %1881 = vmatpush3.bf16.msra.mxu0 %v2075_v45 }
 0x2fd   : > { %v1159_v42 = vmul.f32 %v2116_v41, %v2108_v15  ;;  %1882 = vmatprep.subr.bf16.mxu0 %v2077_v47 }
 0x2ff   : > { %v1160_v27 = vpack.c.bf16 %v1159_v42, %v1159_v42 }
 0x300   : > { %1883 = vmatpush3.bf16.msra.mxu0 %v2079_v28 }
 0x301   : > { %1961 = vmatmul.mubr.msk.bf16.vlgmr.msra.gmra.mxu1 %vm832_vm3, %v1160_v27  ;;  %1809 = vst.msk [vmem:[%s2491_s12 + $0xc] sm:$0xf] %vm845_vm4, %v1160_v27  ;;  %1884 = vmatprep.subr.bf16.mxu0 %v2081_v32 }
 0x302   : > { %1895 = vmatpush3.bf16.msra.mxu1 %v2076_v46 }
 0x303   : > { %1896 = vmatprep.subr.bf16.mxu1 %v2078_v48 }
 0x304   : > { %1885 = vmatpush3.bf16.msra.mxu0 %v2083_v50 }
 0x305   : > { %1886 = vmatprep.subr.bf16.mxu0 %v2085_v52 }
 0x306   : > { %1897 = vmatpush3.bf16.msra.mxu1 %v2080_v29 }
 0x307   : > { %1898 = vmatprep.subr.bf16.mxu1 %v2082_v49 }
 0x308   : > { %1887 = vmatpush3.bf16.msra.mxu0 %v2087_v54 }
 0x30a   : > { %1899 = vmatpush3.bf16.msra.mxu1 %v2084_v51 }
 0x30b   : > { %1900 = vmatprep.subr.bf16.mxu1 %v2086_v53 }
 0x30e   : > { %1901 = vmatpush3.bf16.msra.mxu1 %v2088_v55 }
 0x30f   : > { %1902 = vmatprep.subr.bf16.mxu1 %v2091_v56 }
 0x312   : > { %1903 = vmatpush3.bf16.msra.mxu1 %v2092_v57 }
 0x313   : > { %1904 = vmatprep.subr.bf16.mxu1 %v2093_v58 }
 0x316   : > { %1905 = vmatpush3.bf16.msra.mxu1 %v2094_v59 }
 0x317   : > { %1906 = vmatprep.subr.bf16.mxu1 %v2095_v60 }
 0x31a   : > { %1907 = vmatpush3.bf16.msra.mxu1 %v2096_v61 }
 0x31b   : > { %1908 = vmatprep.subr.bf16.mxu1 %v2097_v62 }
 0x31e   : > { %1909 = vmatpush3.bf16.msra.mxu1 %v2098_v63 }
 0x3a9   : > { %v889_v0 = vpop.f32.mrf.mxu1 }
 0x3aa   : > { %v895_v1 = vpack.c.bf16 %v889_v0, %v889_v0 }
 0x3ab   : > { %v1926_v2 = vpop.f32.mrf.mxu1 }
 0x3ac   : > { %896 = vst [vmem:[#allocation2] sm:$0xf] %v895_v1 }
 0x3ad   : > { %v892_v3 = vpop.f32.mrf.mxu1 }
 0x3af   : > { %v1927_v4 = vpop.f32.mrf.mxu1 }
 0x3b1   : > { %v994_v5 = vpop.f32.mrf.mxu1 }
 0x3b2   : > { %v1000_v6 = vpack.c.bf16 %v994_v5, %v994_v5 }
 0x3b3   : > { %v1938_v7 = vpop.f32.mrf.mxu1 }
 0x3b4   : > { %1001 = vst [vmem:[#allocation2 + $0x4] sm:$0xf] %v1000_v6 }
 0x3b5   : > { %v997_v8 = vpop.f32.mrf.mxu1 }
 0x3b7   : > { %v1939_v10 = vpop.f32.mrf.mxu1 }
 0x3b9   : > { %v1099_v11 = vpop.f32.mrf.mxu1 }
 0x3ba   : > { %v1105_v12 = vpack.c.bf16 %v1099_v11, %v1099_v11 }
 0x3bb   : > { %v1950_v13 = vpop.f32.mrf.mxu1  ;;  %v1212_v14 = vld [vmem:[#allocation2] sm:$0xff] }
 0x3bc   : > { %1106 = vst [vmem:[#allocation2 + $0x8] sm:$0xf] %v1105_v12  ;;  %v1811_v15 = vcombine.low %v1212_v14, %v1212_v14  ;;  %v1812_v16 = vcombine.high %v1212_v14, %v1212_v14 }
 0x3bd   : > { %v1102_v17 = vpop.f32.mrf.mxu1 }
 0x3be   : > { %1516 = vmatprep.mubr.bf16.mxu0 %v1812_v16 }
 0x3bf   : > { %v1951_v18 = vpop.f32.mrf.mxu1  ;;  %1517 = vmatmul.mubr.bf16.vlgmr.msra.gmra.mxu0 %v1811_v15 }
 0x3c1   : > { %v1204_v19 = vpop.f32.mrf.mxu1 }
 0x3c2   : > { %v1210_v20 = vpack.c.bf16 %v1204_v19, %v1204_v19 }
 0x3c3   : > { %v1962_v21 = vpop.f32.mrf.mxu1 }
 0x3c4   : > { %1211 = vst [vmem:[#allocation2 + $0xc] sm:$0xf] %v1210_v20 }
 0x3c5   : > { %v1207_v22 = vpop.f32.mrf.mxu1 }
 0x3c7   : > { %v1963_v23 = vpop.f32.mrf.mxu1 }
 0x3cb   : > { %v1213_v24 = vld [vmem:[#allocation2 + $0x8] sm:$0xff] }
 0x3cc   : > { %v1813_v25 = vcombine.low %v1213_v24, %v1213_v24  ;;  %v1814_v30 = vcombine.high %v1213_v24, %v1213_v24 }
 0x3ce   : > { %1556 = vmatprep.mubr.bf16.mxu1 %v1814_v30 }
 0x3cf   : > { %1557 = vmatmul.mubr.bf16.vlgmr.msra.gmra.mxu1 %v1813_v25 }
 0x3d0   : > { %2130 = shalt.err (!%p2127_p5)
}
 0x3d1   : > { %s2131_s12 = scalar_lea.hbm %s2605_s11, 256  ;;  %s2135_s28 = scalar_lea.hbm %s2682_s6, 512 }
 0x3d2   : > { %p2132_p6 = scmp.ne.s32.totalorder %s2605_s11, %s2131_s12  ;;  %p2136_p10 = scmp.lt.s32.totalorder %s2605_s11, %s2682_s6 }
 0x3d3   : > { %p2137_p11 = scmp.lt.s32.totalorder %s2135_s28, %s2131_s12 }
 0x3d4   : > { %p2133_p7 = pnand %p2132_p6, %p2307_p4 }
 0x3d5   : > { %p2138_p12 = por %p2137_p11, %p2136_p10 }
 0x3d6   : > { %p2134_p9 = pneg %p2133_p7 }
 0x3d8   : > { %p2139_p13 = pnand %p2138_p12, %p2134_p9 }
 0x3da   : > { %2142 = shalt.err (!%p2139_p13)
}
 0x3db   : > { %s2229_s15 = smov 64   ;;  %s2230_s17 = smov 4   ;;  %v1576_v41 = vld [vmem:[%s2597_s27] sm:$0xff] }
 0x3dc   : > { %1965 = dma.vmem_to_hbm [thread:$0]  (%p2307_p4), %s2608_s13, 256, %s2605_s11, %s1585_s14, %s2229_s15, %s2229_s15, %s2230_s17  }
 0x3dd   : > { %s1850_s18 = sshll.u32 %s2215_s24, 7  ;;  %s1598_s12 = sshll.u32 %s2597_s27, 4  ;;  %s1599_s12 = int_to_ptr.vmem [resolvable:$true] %s1598_s12 }
 0x3de   : > { %s1596_s13 = scalar_lea.hbm %s2681_s5, %s1850_s18  ;;  %s1580_s14 = scalar_lea.sflag [#allocation4], %s2487_s8 }
 0x3df   : > { %s2143_s19 = scalar_lea.vmem %s1599_s12, 128  ;;  %s2231_s28 = smov [#allocation3]  }
 0x3e0   : > { %p2144_p0 = scmp.ne.s32.totalorder %s1599_s12, %s2143_s19  ;;  %s2147_s30 = sshll.u32 %s2231_s28, 4  ;;  %s2148_s30 = int_to_ptr.vmem [resolvable:$false] %s2147_s30 }
 0x3e1   : > { %s2149_s24 = scalar_lea.vmem %s2148_s30, 256  ;;  %p2150_p3 = scmp.lt.s32.totalorder %s1599_s12, %s2148_s30 }
 0x3e2   : > { %p2145_p1 = pnand %p2144_p0, %p2307_p4  ;;  %p2151_p5 = scmp.lt.s32.totalorder %s2149_s24, %s2143_s19 }
 0x3e4   : > { %p2146_p2 = pneg %p2145_p1  ;;  %p2152_p6 = por %p2151_p5, %p2150_p3 }
 0x3e6   : > { %p2153_p7 = pnand %p2152_p6, %p2146_p2 }
 0x47f   : > { %v1888_v36 = vpop.f32.mrf.mxu0 }
 0x481   : > { %v1889_v37 = vpop.f32.mrf.mxu0 }
 0x482   : > { %v1890_v39 = vadd.f32 %v1889_v37, %v1888_v36 }
 0x483   : > { %v1891_v33 = vpop.f32.mrf.mxu0 }
 0x485   : > { %v1892_v38 = vpop.f32.mrf.mxu0 }
 0x48f   : > { %v1910_v31 = vpop.f32.mrf.mxu1 }
 0x491   : > { %v1911_v9 = vpop.f32.mrf.mxu1 }
 0x492   : > { %v1912_v40 = vadd.f32 %v1911_v9, %v1910_v31 }
 0x493   : > { %v1913_v42 = vpop.f32.mrf.mxu1 }
 0x494   : > { %v1559_v27 = vadd.f32 %v1912_v40, %v1890_v39 }
 0x495   : > { %v1914_v43 = vpop.f32.mrf.mxu1 }
 0x496   : > { %v1577_v44 = vadd.f32 %v1576_v41, %v1559_v27 }
 0x498   : > { %1578 = vst.msk [vmem:[%s2597_s27] sm:$0xff] %vm540_vm0, %v1577_v44 }
 0x499   : > { %2156 = shalt.err (!%p2153_p7)
}
 0x49a   : > { %s2157_s16 = scalar_lea.hbm %s1596_s13, 128  ;;  %s2161_s15 = scalar_lea.hbm %s2681_s5, 256 }
 0x49b   : > { %p2158_p9 = scmp.ne.s32.totalorder %s1596_s13, %s2157_s16  ;;  %p2162_p12 = scmp.lt.s32.totalorder %s1596_s13, %s2681_s5 }
 0x49c   : > { %p2163_p13 = scmp.lt.s32.totalorder %s2161_s15, %s2157_s16 }
 0x49d   : > { %p2159_p10 = pnand %p2158_p9, %p2307_p4 }
 0x49e   : > { %p2164_p0 = por %p2163_p13, %p2162_p12 }
 0x49f   : > { %p2160_p11 = pneg %p2159_p10 }
 0x4a1   : > { %p2165_p1 = pnand %p2164_p0, %p2160_p11 }
 0x4a3   : > { %2168 = shalt.err (!%p2165_p1)
}
 0x4a4   : > { %1964 = dma.vmem_to_hbm [thread:$0]  (%p2307_p4), %s1599_s12, 128, %s1596_s13, %s1580_s14  }
 0x4a5 PF: > { %p1975_p2 = scmp.ge.s32.totalorder %s2223_s26, 2  ;;  %s1628_s20 = sand.u32 1, %s2203_s21  }
 0x4a6   : > { %s1629_s11 = scalar_lea.sflag [#allocation4], %s1628_s20 }
 0x4a7   : > { %p1969_p3 = pnand %p1975_p2, %p2314_p8 }
 0x4a9   : > { %p1970_p5 = pneg %p1969_p3 }
 0x4ab   : > { %2194 = dma.done.wait (%p1970_p5), %s1629_s11, 128  }
 0x4ac   : > { %2196 = vsyncadd (%p1970_p5), %s1629_s11, 4294967168  ;;  %s1638_s19 = scalar_lea.sflag [#allocation6], %s1628_s20 }
 0x4ad   : > { %2198 = dma.done.wait (%p1970_p5), %s1638_s19, 256  }
 0x4ae   : > { %2200 = vsyncadd (%p1970_p5), %s1638_s19, 4294967040  ;;  %s23_s26 = sadd.s32 1, %s2223_s26   ;;  %s2685_s21 = smov %s2207_s22 }
 0x4af   : > { %p20_p6 = scmp.ge.s32.totalorder %s23_s26, 4   ;;  %s2686_s22 = smov %s2211_s23 }
 0x4b0   : > { %s2687_s23 = smov %s2320_s10  ;;  %s2688_s24 = smov %s2219_s25 }
 0x4b1   : > { %s2689_s25 = smov %s2691_s29  ;;  %22 = sbr.rel (!%p20_p6) target bundleno = 6 (0x6), region = 108 }
 0x4b6   :  { %1643 = vsyncpa [#allocation4], 1 }
 0x4b7   :  { %1645 = vsyncpa [#allocation4 + $0x1], 1 }
 0x4b8   :  { %1646 = vsyncpa [#allocation6], 1 }
 0x4b9   :  { %1648 = vsyncpa [#allocation6 + $0x1], 1 }

</bundles_post_ra>
